<compile_context>
chip_gen: v5e
topology: v5e:2x2
jax: 0.10.0
libtpu: 0.0.40
codegen_flags: <defaults>
</compile_context>

<pallas_src>
import functools

import jax
import jax.numpy as jnp
from jax.experimental import pallas as pl
from jax.experimental.pallas import tpu as pltpu


def _round_up(n: int, m: int) -> int:
    return ((n + m - 1) // m) * m


def _pad2d(a, rows, cols):
    r, c = a.shape
    return jnp.pad(a, ((0, rows - r), (0, cols - c)))


def _sigmoid(x):
    # 1 / (1 + e^-x): exp on the EUP, approx reciprocal also on the EUP,
    # keeping the VALU slot free for the bias adds.
    return pl.reciprocal(1.0 + jnp.exp(-x), approx=True)


def perception_kernel(x_ref, w1_ref, b1_ref, w2_ref, b2_ref, o_ref):
    # layer 1: bf16 MXU matmul with f32 accumulation
    h = jnp.dot(x_ref[...], w1_ref[...], preferred_element_type=jnp.float32)
    h = h + b1_ref[...]                     # (TB, hid_p) + (1, hid_p) broadcast
    h = _sigmoid(h)
    # layer 2
    y = jnp.dot(h.astype(jnp.bfloat16), w2_ref[...],
                preferred_element_type=jnp.float32)
    y = y + b2_ref[...]                     # (TB, out_p) + (1, out_p) broadcast
    o_ref[...] = _sigmoid(y).astype(o_ref.dtype)


@jax.jit
def perception_forward(x, w1, b1, w2, b2):
    """x: (B, in_dim) f32 -> (B, out_dim) f32."""
    B, in_dim = x.shape
    hid_dim = w1.shape[1]
    out_dim = w2.shape[1]

    # --- pad everything to lane/sublane-friendly sizes -----------------------
    # Adaptive batch tile: tiny batches pad only to the 8-row sublane multiple,
    # big batches stream in <=512-row tiles (keeps VMEM small, amortizes the
    # ~0.35us per-grid-step overhead).
    TB = min(512, _round_up(B, 8))
    B_p = _round_up(B, TB)
    in_p = _round_up(in_dim, 128)
    hid_p = _round_up(hid_dim, 128)
    out_p = _round_up(out_dim, 128)

    # bf16 inputs for the MXU; zero padding keeps the math exact:
    #  - padded in_dim columns/rows contribute 0 to layer-1 logits
    #  - padded hidden units get logit 0 -> sigmoid 0.5, but the matching
    #    W2 rows are zero, so they contribute 0 to layer-2 logits
    #  - padded out columns / batch rows are sliced off at the end
    x_p = _pad2d(x, B_p, in_p).astype(jnp.bfloat16)
    w1_p = _pad2d(w1, in_p, hid_p).astype(jnp.bfloat16)
    w2_p = _pad2d(w2, hid_p, out_p).astype(jnp.bfloat16)
    b1_p = _pad2d(b1.reshape(1, hid_dim), 1, hid_p)          # f32
    b2_p = _pad2d(b2.reshape(1, out_dim), 1, out_p)          # f32

    grid = (B_p // TB,)

    cost = pl.CostEstimate(
        flops=2 * B_p * (in_p * hid_p + hid_p * out_p),
        transcendentals=B_p * (hid_p + out_p),
        bytes_accessed=(x_p.size * 2 + w1_p.size * 2 + w2_p.size * 2
                        + b1_p.size * 4 + b2_p.size * 4 + B_p * out_p * 4),
    )

    out_arr = pl.pallas_call(
        perception_kernel,
        out_shape=jax.ShapeDtypeStruct((B_p, out_p), jnp.float32),
        grid=grid,
        in_specs=[
            pl.BlockSpec((TB, in_p), lambda i: (i, 0)),      # x: tiled over batch
            pl.BlockSpec((in_p, hid_p), lambda i: (0, 0)),   # W1: resident
            pl.BlockSpec((1, hid_p), lambda i: (0, 0)),      # b1: resident
            pl.BlockSpec((hid_p, out_p), lambda i: (0, 0)),  # W2: resident
            pl.BlockSpec((1, out_p), lambda i: (0, 0)),      # b2: resident
        ],
        out_specs=pl.BlockSpec((TB, out_p), lambda i: (i, 0)),
        compiler_params=pltpu.CompilerParams(
            # batch axis is independent -> shard across TCs on v7x (no-op on
            # v5e/v6e single-core chips).
            dimension_semantics=("parallel",),
        ),
        cost_estimate=cost,
    )(x_p, w1_p, b1_p, w2_p, b2_p)

    return out_arr[:B, :out_dim]


def reference_forward(x, w1, b1, w2, b2):
    h = jax.nn.sigmoid(x @ w1 + b1)
    return jax.nn.sigmoid(h @ w2 + b2)


if __name__ == "__main__":
    # Small shapes consistent with Perception(in_dim, hid_dim, out_dim)
    batch, in_dim, hid_dim, out_dim = 8, 32, 64, 16

    key = jax.random.PRNGKey(0)
    kx, kw1, kb1, kw2, kb2 = jax.random.split(key, 5)

    x = jax.random.normal(kx, (batch, in_dim), dtype=jnp.float32)
    w1 = jax.random.normal(kw1, (in_dim, hid_dim), dtype=jnp.float32)
    b1 = jax.random.normal(kb1, (hid_dim,), dtype=jnp.float32)
    w2 = jax.random.normal(kw2, (hid_dim, out_dim), dtype=jnp.float32)
    b2 = jax.random.normal(kb2, (out_dim,), dtype=jnp.float32)

    out = perception_forward(x, w1, b1, w2, b2)
    out = jax.block_until_ready(out)

    ref = reference_forward(x, w1, b1, w2, b2)
    assert out.shape == (batch, out_dim)
    # bf16 MXU inputs + approx reciprocal => compare with a loose tolerance
    # against the f32 reference (sigmoid outputs are in (0, 1)).
    assert jnp.allclose(out, ref, atol=2e-2, rtol=2e-2), (
        float(jnp.max(jnp.abs(out - ref))))

    print("KERNEL_OK")
</pallas_src>

<mosaic_0001>
module attributes {stable_mosaic.version = 11 : i64} {
  func.func @perception_kernel(%arg0: i32, %arg1: memref<8x128xbf16, #tpu.memory_space<vmem>>, %arg2: memref<128x128xbf16, #tpu.memory_space<vmem>>, %arg3: memref<1x128xf32, #tpu.memory_space<vmem>>, %arg4: memref<128x128xbf16, #tpu.memory_space<vmem>>, %arg5: memref<1x128xf32, #tpu.memory_space<vmem>>, %arg6: memref<8x128xf32, #tpu.memory_space<vmem>>) attributes {dimension_semantics = [#tpu.dimension_semantics<parallel>], iteration_bounds = array<i64: 1>, scalar_prefetch = 0 : i64, scratch_operands = 0 : i64, tpu.core_type = #tpu.core_type<tc>, window_params = [{transform_indices = @transform_0, window_bounds = array<i64: 8, 128>}, {pipeline_mode = #tpu.pipeline_mode<synchronous>, transform_indices = @transform_1, window_bounds = array<i64: 128, 128>}, {pipeline_mode = #tpu.pipeline_mode<synchronous>, transform_indices = @transform_2, window_bounds = array<i64: 1, 128>}, {pipeline_mode = #tpu.pipeline_mode<synchronous>, transform_indices = @transform_3, window_bounds = array<i64: 128, 128>}, {pipeline_mode = #tpu.pipeline_mode<synchronous>, transform_indices = @transform_4, window_bounds = array<i64: 1, 128>}, {transform_indices = @transform_5, window_bounds = array<i64: 8, 128>}]} {
    %c0 = arith.constant 0 : index
    %c0_0 = arith.constant 0 : index
    %0 = vector.load %arg1[%c0, %c0_0] : memref<8x128xbf16, #tpu.memory_space<vmem>>, vector<8x128xbf16>
    %c0_1 = arith.constant 0 : index
    %c0_2 = arith.constant 0 : index
    %1 = vector.load %arg2[%c0_1, %c0_2] : memref<128x128xbf16, #tpu.memory_space<vmem>>, vector<128x128xbf16>
    %cst = arith.constant dense<0.000000e+00> : vector<8x128xf32>
    %2 = tpu.matmul %0, %1, %cst {dimension_numbers = #tpu.dot_dimension_numbers<[1], [0], [0], [1], [0, 0, 1, 1], [], []>} : vector<8x128xbf16>, vector<128x128xbf16>, vector<8x128xf32> -> vector<8x128xf32>
    %c0_3 = arith.constant 0 : index
    %c0_4 = arith.constant 0 : index
    %3 = vector.load %arg3[%c0_3, %c0_4] : memref<1x128xf32, #tpu.memory_space<vmem>>, vector<1x128xf32>
    %4 = vector.broadcast %3 : vector<1x128xf32> to vector<8x128xf32>
    %5 = arith.addf %2, %4 : vector<8x128xf32>
    %cst_5 = arith.constant 0.000000e+00 : f32
    %6 = vector.broadcast %cst_5 : f32 to vector<8x128xf32>
    %7 = arith.subf %6, %5 : vector<8x128xf32>
    %8 = math.exp %7 : vector<8x128xf32>
    %cst_6 = arith.constant 1.000000e+00 : f32
    %9 = vector.broadcast %cst_6 : f32 to vector<8x128xf32>
    %10 = arith.addf %9, %8 : vector<8x128xf32>
    %11 = tpu.reciprocal %10 {approx = true} : vector<8x128xf32> -> vector<8x128xf32>
    %12 = arith.truncf %11 : vector<8x128xf32> to vector<8x128xbf16>
    %c0_7 = arith.constant 0 : index
    %c0_8 = arith.constant 0 : index
    %13 = vector.load %arg4[%c0_7, %c0_8] : memref<128x128xbf16, #tpu.memory_space<vmem>>, vector<128x128xbf16>
    %cst_9 = arith.constant dense<0.000000e+00> : vector<8x128xf32>
    %14 = tpu.matmul %12, %13, %cst_9 {dimension_numbers = #tpu.dot_dimension_numbers<[1], [0], [0], [1], [0, 0, 1, 1], [], []>} : vector<8x128xbf16>, vector<128x128xbf16>, vector<8x128xf32> -> vector<8x128xf32>
    %c0_10 = arith.constant 0 : index
    %c0_11 = arith.constant 0 : index
    %15 = vector.load %arg5[%c0_10, %c0_11] : memref<1x128xf32, #tpu.memory_space<vmem>>, vector<1x128xf32>
    %16 = vector.broadcast %15 : vector<1x128xf32> to vector<8x128xf32>
    %17 = arith.addf %14, %16 : vector<8x128xf32>
    %cst_12 = arith.constant 0.000000e+00 : f32
    %18 = vector.broadcast %cst_12 : f32 to vector<8x128xf32>
    %19 = arith.subf %18, %17 : vector<8x128xf32>
    %20 = math.exp %19 : vector<8x128xf32>
    %cst_13 = arith.constant 1.000000e+00 : f32
    %21 = vector.broadcast %cst_13 : f32 to vector<8x128xf32>
    %22 = arith.addf %21, %20 : vector<8x128xf32>
    %23 = tpu.reciprocal %22 {approx = true} : vector<8x128xf32> -> vector<8x128xf32>
    %c0_14 = arith.constant 0 : index
    %c0_15 = arith.constant 0 : index
    %24 = vector.load %arg6[%c0_14, %c0_15] : memref<8x128xf32, #tpu.memory_space<vmem>>, vector<8x128xf32>
    tpu.vector_store %arg6[%c0_14, %c0_15], %23 {strides = array<i32>} : memref<8x128xf32, #tpu.memory_space<vmem>>, vector<8x128xf32>,
    return
  }
  func.func @transform_0(%arg0: i32) -> (i32, i32) {
    %c0_i32 = arith.constant 0 : i32
    %c0_i32_0 = arith.constant 0 : i32
    return %arg0, %c0_i32 : i32, i32
  }
  func.func @transform_1(%arg0: i32) -> (i32, i32) {
    %c0_i32 = arith.constant 0 : i32
    %c0_i32_0 = arith.constant 0 : i32
    %c0_i32_1 = arith.constant 0 : i32
    return %c0_i32, %c0_i32_0 : i32, i32
  }
  func.func @transform_2(%arg0: i32) -> (i32, i32) {
    %c0_i32 = arith.constant 0 : i32
    %c0_i32_0 = arith.constant 0 : i32
    %c0_i32_1 = arith.constant 0 : i32
    return %c0_i32, %c0_i32_0 : i32, i32
  }
  func.func @transform_3(%arg0: i32) -> (i32, i32) {
    %c0_i32 = arith.constant 0 : i32
    %c0_i32_0 = arith.constant 0 : i32
    %c0_i32_1 = arith.constant 0 : i32
    return %c0_i32, %c0_i32_0 : i32, i32
  }
  func.func @transform_4(%arg0: i32) -> (i32, i32) {
    %c0_i32 = arith.constant 0 : i32
    %c0_i32_0 = arith.constant 0 : i32
    %c0_i32_1 = arith.constant 0 : i32
    return %c0_i32, %c0_i32_0 : i32, i32
  }
  func.func @transform_5(%arg0: i32) -> (i32, i32) {
    %c0_i32 = arith.constant 0 : i32
    %c0_i32_0 = arith.constant 0 : i32
    return %arg0, %c0_i32 : i32, i32
  }
}

</mosaic_0001>

<bundles_post_ra>
// kernel: perception_forward.1
= control target key start
LH: loop header
LB: loop body
LE: loop exit
PB: predicated region body
PF: predicated region fallthrough
CT: control target
= control target key end

     0   :  { %s420_s0 = inlined_call_operand.vmem [shape: bf16[8,128], index: 0, kind: input, shape index: {}]   ;;  %s421_s1 = inlined_call_operand.vmem [shape: bf16[128,128], index: 1, kind: input, shape index: {}]   ;;  %s422_s2 = inlined_call_operand.vmem [shape: f32[1,128], index: 2, kind: input, shape index: {}]   ;;  %s423_s3 = inlined_call_operand.vmem [shape: bf16[128,128], index: 3, kind: input, shape index: {}]   ;;  %s424_s4 = inlined_call_operand.vmem [shape: f32[1,128], index: 4, kind: input, shape index: {}]   ;;  %s425_s5 = inlined_call_operand.hbm [shape: f32[8,128], index: 5, kind: output, shape index: {}]  }
   0x1   :  { %v283_v0 = vld [vmem:[%s421_s1 + $0x38] sm:$0xff]  ;;  %v282_v1 = vld [vmem:[%s421_s1 + $0x30] sm:$0xff] }
   0x2   :  { %90 = vmatpush.bf16.msra.mxu0 %v283_v0  ;;  %v291_v2 = vld [vmem:[%s423_s3 + $0x38] sm:$0xff] }
   0x3   :  { %10 = vsyncpa [#allocation3], 0  ;;  %177 = vmatpush.bf16.msra.mxu1 %v291_v2  ;;  %v290_v3 = vld [vmem:[%s423_s3 + $0x30] sm:$0xff]  ;;  %v281_v4 = vld [vmem:[%s421_s1 + $0x28] sm:$0xff]  ;;  %s203_s6 = sshll.u32 %s425_s5, 4  ;;  %s204_s6 = int_to_ptr.hbm [resolvable:$true] %s203_s6 }
   0x4   :  { %v280_v5 = vld [vmem:[%s421_s1 + $0x20] sm:$0xff]  ;;  %v279_v6 = vld [vmem:[%s421_s1 + $0x18] sm:$0xff]  ;;  %v278_v7 = vld [vmem:[%s421_s1 + $0x10] sm:$0xff] }
   0x5   :  { %v277_v8 = vld [vmem:[%s421_s1 + $0x8] sm:$0xff]  ;;  %v276_v9 = vld [vmem:[%s421_s1] sm:$0xff]  ;;  %v287_v13 = vld [vmem:[%s423_s3 + $0x18] sm:$0xff] }
   0x6   :  { %91 = vmatpush.bf16.msra.mxu0 %v282_v1  ;;  %v21_v10 = vld [vmem:[%s420_s0] sm:$0xf]  ;;  %v289_v11 = vld [vmem:[%s423_s3 + $0x28] sm:$0xff]  ;;  %v286_v14 = vld [vmem:[%s423_s3 + $0x10] sm:$0xff] }
   0x7   :  { %178 = vmatpush.bf16.msra.mxu1 %v290_v3  ;;  %v288_v12 = vld [vmem:[%s423_s3 + $0x20] sm:$0xff]  ;;  %v285_v15 = vld [vmem:[%s423_s3 + $0x8] sm:$0xff] }
   0x8   :  { %v284_v16 = vld [vmem:[%s423_s3] sm:$0xff] }
   0x9   :  { %v293_v17 = vld [vmem:[%s422_s2] ss:$0 sm:$0xff]  ;;  %s329_s2 = smov [#allocation2]  }
   0xa   :  { %92 = vmatpush.bf16.msra.mxu0 %v281_v4  ;;  %v294_v27 = vld [vmem:[%s424_s4] ss:$0 sm:$0xff]  ;;  %s201_s3 = sshll.u32 %s329_s2, 4  ;;  %s202_s3 = int_to_ptr.vmem [resolvable:$true] %s201_s3 }
   0xb   :  { %179 = vmatpush.bf16.msra.mxu1 %v289_v11 }
   0xe   :  { %93 = vmatpush.bf16.msra.mxu0 %v280_v5 }
   0xf   :  { %180 = vmatpush.bf16.msra.mxu1 %v288_v12 }
  0x12   :  { %94 = vmatpush.bf16.msra.mxu0 %v279_v6 }
  0x13   :  { %181 = vmatpush.bf16.msra.mxu1 %v287_v13 }
  0x16   :  { %95 = vmatpush.bf16.msra.mxu0 %v278_v7 }
  0x17   :  { %182 = vmatpush.bf16.msra.mxu1 %v286_v14 }
  0x1a   :  { %96 = vmatpush.bf16.msra.mxu0 %v277_v8 }
  0x1b   :  { %183 = vmatpush.bf16.msra.mxu1 %v285_v15 }
  0x1e   :  { %97 = vmatpush.bf16.msra.mxu0 %v276_v9 }
  0x1f   :  { %184 = vmatpush.bf16.msra.mxu1 %v284_v16 }
  0x21   :  { %98 = vmatmul.bf16.vlgmr.msra.gmra.mxu0 %v21_v10 }
  0x9e   :  { %v99_v18 = vpop.f32.mrf.mxu0 }
  0x9f   :  { %v100_v19 = vadd.f32 %v293_v17, %v99_v18 }
  0xa1   :  { %v103_v20 = vsub.f32 0.0, %v100_v19 }
  0xa3   :  { %v104_v21 = vmul.f32 1.442695, %v103_v20 }
  0xa5   :  { %295 = vpow2.f32 %v104_v21 }
  0xa6   :  { %v101_v22 = vpop.f32.mrf.mxu0 }
  0xab   :  { %v296_v23 = vpop.eup %295 }
  0xac   :  { %v106_v24 = vadd.f32 1.0, %v296_v23 }
  0xae   :  { %297 = vrcp.f32 %v106_v24 }
  0xb4   :  { %v298_v25 = vpop.eup %297 }
  0xb5   :  { %v108_v26 = vpack.c.bf16 %v298_v25, %v298_v25 }
  0xb7   :  { %185 = vmatmul.bf16.vlgmr.msra.gmra.mxu1 %v108_v26 }
 0x134   :  { %v186_v28 = vpop.f32.mrf.mxu1 }
 0x135   :  { %v187_v29 = vadd.f32 %v294_v27, %v186_v28 }
 0x137   :  { %v190_v30 = vsub.f32 0.0, %v187_v29 }
 0x139   :  { %v191_v31 = vmul.f32 1.442695, %v190_v30 }
 0x13b   :  { %299 = vpow2.f32 %v191_v31 }
 0x13c   :  { %v188_v32 = vpop.f32.mrf.mxu1 }
 0x141   :  { %v300_v33 = vpop.eup %299 }
 0x142   :  { %v193_v34 = vadd.f32 1.0, %v300_v33 }
 0x144   :  { %301 = vrcp.f32 %v193_v34 }
 0x14a   :  { %v302_v35 = vpop.eup %301 }
 0x14b   :  { %195 = vst [vmem:[#allocation2] sm:$0xff] %v302_v35 }
 0x14c   :  { %206 = dma.vmem_to_hbm [thread:$0]  %s202_s3, 128, %s204_s6, [#allocation3]  }
 0x14d   :  { %327 = dma.done.wait [#allocation3], 128  }
 0x14e   :  { %328 = vsyncadd [#allocation3], 4294967168 }
 0x14f   :  { %211 = vsyncpa [#allocation3], 1 }

</bundles_post_ra>
